<compile_context>
chip_gen: v7x
topology: tpu7x:2x2x1
jax: 0.10.0
libtpu: 0.0.40
codegen_flags: <defaults>
</compile_context>

<pallas_src>
import functools
import math

import jax
import jax.numpy as jnp
from jax.experimental import pallas as pl
from jax.experimental.pallas import tpu as pltpu


# Fits v7x (64 MiB VMEM) as well as v5e/v6e (128 MiB).
VMEM_LIMIT = 48 * 1024 * 1024


# ----------------------------------------------------------------------------
# helpers
# ----------------------------------------------------------------------------
def _round_up(x, m):
    return (x + m - 1) // m * m


def _pad2(x, rows, cols):
    pr, pc = rows - x.shape[0], cols - x.shape[1]
    if pr == 0 and pc == 0:
        return x
    return jnp.pad(x, ((0, pr), (0, pc)))


def _pad3(x, rows, cols):
    pr, pc = rows - x.shape[1], cols - x.shape[2]
    if pr == 0 and pc == 0:
        return x
    return jnp.pad(x, ((0, 0), (0, pr), (0, pc)))


def _maybe_buffered_spec(shape, index_map, multi_buffer):
    if multi_buffer:
        try:
            return pl.BlockSpec(shape, index_map, pipeline_mode=pl.Buffered(3))
        except TypeError:
            pass
    return pl.BlockSpec(shape, index_map)


# ----------------------------------------------------------------------------
# Tiled matmul kernel with fused LN prologue and fused epilogue
#   o = [residual +] [scale *] [row_mask *] act(LN(x) @ w [^T] + b)
# ----------------------------------------------------------------------------
def _matmul_kernel(*refs, act, has_ln, has_rowmask, has_residual, has_scale,
                   transpose_w, single_k, true_k):
    it = iter(refs)
    x_ref = next(it)
    w_ref = next(it)
    b_ref = next(it)
    lng_ref = next(it) if has_ln else None
    lnb_ref = next(it) if has_ln else None
    rm_ref = next(it) if has_rowmask else None
    res_ref = next(it) if has_residual else None
    sc_ref = next(it) if has_scale else None
    o_ref = next(it)
    acc_ref = None if single_k else next(it)

    x = x_ref[...]
    if has_ln:
        # LayerNorm fused into the prologue.  Padded K columns are zero and the
        # padded weight rows are zero, so E[x]/E[x^2] over true_k stays exact.
        xf = x.astype(jnp.float32)
        inv_k = 1.0 / float(true_k)
        mu = jnp.sum(xf, axis=-1, keepdims=True) * inv_k
        ex2 = jnp.sum(xf * xf, axis=-1, keepdims=True) * inv_k
        var = ex2 - mu * mu
        xn = (xf - mu) * jax.lax.rsqrt(var + 1e-5)
        x = (xn * lng_ref[...].astype(jnp.float32)
             + lnb_ref[...].astype(jnp.float32)).astype(jnp.bfloat16)

    if transpose_w:
        part = jax.lax.dot_general(
            x, w_ref[...], (((1,), (1,)), ((), ())),
            preferred_element_type=jnp.float32)
    else:
        part = jnp.dot(x, w_ref[...], preferred_element_type=jnp.float32)

    def _epilogue(y):
        y = y + b_ref[...].astype(jnp.float32)
        if act == "gelu":
            # TODO(synk): PyTorch nn.GELU default is exact erf; tanh approx used.
            y = jax.nn.gelu(y, approximate=True)
        if has_rowmask:
            y = y * rm_ref[...].astype(jnp.float32)
        if has_scale:
            y = y * sc_ref[0, 0]            # scalar read from SMEM
        if has_residual:
            y = y + res_ref[...].astype(jnp.float32)
        o_ref[...] = y.astype(o_ref.dtype)

    if single_k:
        _epilogue(part)
    else:
        k = pl.program_id(2)

        @pl.when(k == 0)
        def _():
            acc_ref[...] = jnp.zeros_like(acc_ref)

        acc_ref[...] += part

        @pl.when(k == pl.num_programs(2) - 1)
        def _():
            _epilogue(acc_ref[...])


def linear(x2d, w, b=None, *, act="none", row_mask=None, residual=None,
           res_scale=None, ln=None, transpose_w=False, out_dtype=jnp.bfloat16,
           tm=256, tn=1024, tk=1024):
    """y = epilogue(LN(x2d) @ w + b) via a tiled, pipelined Pallas matmul.

    transpose_w=True contracts x (M,K) against w (N,K) over K (no HBM
    transpose of w is ever materialized).  ln=(gamma,beta) fuses LayerNorm
    into the prologue (forces a single K block, drops the accumulator).
    """
    M, K = x2d.shape
    if transpose_w:
        N, Kw = w.shape
    else:
        Kw, N = w.shape
    assert K == Kw

    tm = min(tm, _round_up(M, 8))
    tn = min(tn, _round_up(N, 128))
    if ln is not None:
        tk = _round_up(K, 128)              # whole contraction in one block
    else:
        tk = min(tk, _round_up(K, 128))
    Mp, Np, Kp = _round_up(M, tm), _round_up(N, tn), _round_up(K, tk)

    # Give both v7x TensorCores work when the parallel grid would be 1x1.
    if Mp // tm == 1 and Np // tn == 1:
        if Np >= 256 and (Np // 2) % 128 == 0:
            tn = Np // 2
        elif Mp >= 16 and (Mp // 2) % 8 == 0:
            tm = Mp // 2

    gm, gn, nk = Mp // tm, Np // tn, Kp // tk
    single_k = (nk == 1)

    x_p = _pad2(x2d.astype(jnp.bfloat16), Mp, Kp)
    w_bf = w.astype(jnp.bfloat16)
    w_p = _pad2(w_bf, Np, Kp) if transpose_w else _pad2(w_bf, Kp, Np)
    if b is None:
        b_p = jnp.zeros((1, Np), jnp.float32)
    else:
        b_p = _pad2(jnp.reshape(b, (1, N)).astype(jnp.float32), 1, Np)

    if single_k:
        x_map = lambda i, j: (i, 0)
        w_map = (lambda i, j: (j, 0)) if transpose_w else (lambda i, j: (0, j))
        b_map = lambda i, j: (0, j)
        ln_map = lambda i, j: (0, 0)
        rm_map = lambda i, j: (i, 0)
        out_map = lambda i, j: (i, j)
        grid = (gm, gn)
        dims = ("parallel", "parallel")
        scratch = []
    else:
        x_map = lambda i, j, k: (i, k)
        w_map = (lambda i, j, k: (j, k)) if transpose_w else (lambda i, j, k: (k, j))
        b_map = lambda i, j, k: (0, j)
        rm_map = lambda i, j, k: (i, 0)
        out_map = lambda i, j, k: (i, j)
        grid = (gm, gn, nk)
        dims = ("parallel", "parallel", "arbitrary")
        scratch = [pltpu.VMEM((tm, tn), jnp.float32)]

    # Weight-streaming GEMMs (single M tile, several weight blocks) get a
    # deeper pipeline on the weight operand to hide exposed DMA latency.
    multi_buffer_w = (gm == 1) and (gn * nk >= 3)
    w_shape = (tn, tk) if transpose_w else (tk, tn)

    in_specs = [
        pl.BlockSpec((tm, tk), x_map),
        _maybe_buffered_spec(w_shape, w_map, multi_buffer_w),
        pl.BlockSpec((1, tn), b_map),
    ]
    args = [x_p, w_p, b_p]

    has_ln = ln is not None
    if has_ln:
        g_p = _pad2(jnp.reshape(ln[0], (1, K)).astype(jnp.float32), 1, Kp)
        be_p = _pad2(jnp.reshape(ln[1], (1, K)).astype(jnp.float32), 1, Kp)
        in_specs += [pl.BlockSpec((1, tk), ln_map), pl.BlockSpec((1, tk), ln_map)]
        args += [g_p, be_p]

    has_rowmask = row_mask is not None
    if has_rowmask:
        rm_p = _pad2(jnp.reshape(row_mask, (M, 1)).astype(jnp.float32), Mp, 1)
        in_specs.append(pl.BlockSpec((tm, 1), rm_map))
        args.append(rm_p)

    has_residual = residual is not None
    if has_residual:
        res_p = _pad2(residual.astype(jnp.bfloat16), Mp, Np)
        in_specs.append(pl.BlockSpec((tm, tn), out_map))
        args.append(res_p)

    has_scale = res_scale is not None
    if has_scale:
        sc = jnp.reshape(jnp.asarray(res_scale, jnp.float32), (1, 1))
        in_specs.append(pl.BlockSpec(memory_space=pltpu.MemorySpace.SMEM))
        args.append(sc)

    kernel = functools.partial(
        _matmul_kernel, act=act, has_ln=has_ln, has_rowmask=has_rowmask,
        has_residual=has_residual, has_scale=has_scale,
        transpose_w=transpose_w, single_k=single_k, true_k=K)

    out = pl.pallas_call(
        kernel,
        out_shape=jax.ShapeDtypeStruct((Mp, Np), out_dtype),
        grid=grid,
        in_specs=in_specs,
        out_specs=pl.BlockSpec((tm, tn), out_map),
        scratch_shapes=scratch,
        compiler_params=pltpu.CompilerParams(
            dimension_semantics=dims, vmem_limit_bytes=VMEM_LIMIT),
    )(*args)
    return out[:M, :N]


# ----------------------------------------------------------------------------
# Flash-style attention: online softmax, in-kernel causal/padding mask,
# dead-tile skipping (causal future tiles + padded key tiles via kv_len).
# K/V (and Q) can live inside fused projection buffers; offsets select the
# D-sized chunk through the BlockSpec index_map (no HBM slicing).
# ----------------------------------------------------------------------------
def _flash_attn_kernel(kvlen_ref, q_ref, k_ref, v_ref, km_ref, o_ref,
                       m_sc, l_sc, acc_sc, *, scale, causal, tq, tkv):
    b = pl.program_id(0)
    qi = pl.program_id(1)
    ki = pl.program_id(2)

    @pl.when(ki == 0)
    def _():
        m_sc[...] = jnp.full_like(m_sc, -1e30)
        l_sc[...] = jnp.zeros_like(l_sc)
        acc_sc[...] = jnp.zeros_like(acc_sc)

    kv_start = ki * tkv
    live = kv_start < kvlen_ref[b]                 # skip fully-padded key tiles
    if causal:
        live = jnp.logical_and(live, kv_start <= qi * tq + (tq - 1))  # skip future

    @pl.when(live)
    def _():
        q = (q_ref[0] * scale).astype(jnp.bfloat16)   # pre-scaled once per tile
        k = k_ref[0]                                   # (tkv, D) bf16
        v = v_ref[0]                                   # (tkv, D) bf16
        km = km_ref[0]                                 # (1, tkv) f32 key mask

        s = jax.lax.dot_general(q, k, (((1,), (1,)), ((), ())),
                                preferred_element_type=jnp.float32)
        valid = km > 0.0                               # broadcast over rows
        if causal:
            rows = qi * tq + jax.lax.broadcasted_iota(jnp.int32, s.shape, 0)
            cols = kv_start + jax.lax.broadcasted_iota(jnp.int32, s.shape, 1)
            valid = jnp.logical_and(valid, cols <= rows)
        s = jnp.where(valid, s, -1e30)

        m_prev = m_sc[...]
        m_new = jnp.maximum(m_prev, jnp.max(s, axis=-1, keepdims=True))
        alpha = jnp.exp(m_prev - m_new)
        p = jnp.exp(s - m_new)
        p = jnp.where(valid, p, 0.0)                   # hard-mask probabilities
        l_sc[...] = alpha * l_sc[...] + jnp.sum(p, axis=-1, keepdims=True)
        acc_sc[...] = alpha * acc_sc[...] + jnp.dot(
            p.astype(v.dtype), v, preferred_element_type=jnp.float32)
        m_sc[...] = m_new

    @pl.when(ki == pl.num_programs(2) - 1)
    def _():
        l = jnp.maximum(l_sc[...], 1e-30)              # rows w/ zero valid keys
        inv_l = pl.reciprocal(l, approx=True)
        o_ref[0] = (acc_sc[...] * inv_l).astype(o_ref.dtype)


def attention(q_arr, kv_mask, k_arr, v_arr, *, d, q_off=0, k_off=0, v_off=0,
              scale, causal=False, tq=128, tkv=256):
    """q_arr:(B,S,*) k_arr/v_arr:(B,T,*) kv_mask:(B,T) -> (B,S,d).

    The last-dim chunk of width d is selected with block offsets q_off/k_off/
    v_off, so fused QKV / KV projection buffers can be consumed directly.
    """
    B, S = q_arr.shape[:2]
    T = k_arr.shape[1]
    tq = min(tq, _round_up(S, 8))
    tkv = min(tkv, _round_up(T, 8))
    Sp, Tp = _round_up(S, tq), _round_up(T, tkv)

    q_p = _pad3(q_arr.astype(jnp.bfloat16), Sp, q_arr.shape[2])
    k_p = _pad3(k_arr.astype(jnp.bfloat16), Tp, k_arr.shape[2])
    v_p = _pad3(v_arr.astype(jnp.bfloat16), Tp, v_arr.shape[2])
    km_p = _pad3(jnp.reshape(kv_mask, (B, 1, T)).astype(jnp.float32), 1, Tp)

    # true key extent per batch (last valid key index + 1; safe for any padding)
    idx = jnp.arange(1, T + 1, dtype=jnp.int32)[None, :]
    kv_len = jnp.max(idx * kv_mask.astype(jnp.int32), axis=1).astype(jnp.int32)

    kernel = functools.partial(_flash_attn_kernel, scale=scale, causal=causal,
                               tq=tq, tkv=tkv)
    grid_spec = pltpu.PrefetchScalarGridSpec(
        num_scalar_prefetch=1,
        grid=(B, Sp // tq, Tp // tkv),
        in_specs=[
            pl.BlockSpec((1, tq, d), lambda b, i, j, kl, o=q_off: (b, i, o)),
            pl.BlockSpec((1, tkv, d), lambda b, i, j, kl, o=k_off: (b, j, o)),
            pl.BlockSpec((1, tkv, d), lambda b, i, j, kl, o=v_off: (b, j, o)),
            pl.BlockSpec((1, 1, tkv), lambda b, i, j, kl: (b, 0, j)),
        ],
        out_specs=pl.BlockSpec((1, tq, d), lambda b, i, j, kl: (b, i, 0)),
        scratch_shapes=[
            pltpu.VMEM((tq, 1), jnp.float32),   # running max
            pltpu.VMEM((tq, 1), jnp.float32),   # running denom
            pltpu.VMEM((tq, d), jnp.float32),   # output accumulator
        ])
    out = pl.pallas_call(
        kernel,
        out_shape=jax.ShapeDtypeStruct((B, Sp, d), jnp.bfloat16),
        grid_spec=grid_spec,
        compiler_params=pltpu.CompilerParams(
            dimension_semantics=("parallel", "parallel", "arbitrary"),
            vmem_limit_bytes=VMEM_LIMIT),
    )(kv_len, q_p, k_p, v_p, km_p)
    return out[:, :S]


# ----------------------------------------------------------------------------
# Parameter init
# ----------------------------------------------------------------------------
def init_params(key, *, frame_dim, sign_dim, lang_dim, vocab, n_layers, ffn_dim):
    keys = iter(jax.random.split(key, 64))

    def nrm(shape, s=0.02):
        return (s * jax.random.normal(next(keys), shape, jnp.float32)
                ).astype(jnp.bfloat16)

    D = lang_dim
    params = {
        "sign_w": nrm((frame_dim, sign_dim)),
        "sign_b": jnp.zeros((sign_dim,), jnp.float32),
        "post_w": nrm((sign_dim, lang_dim)),
        "post_b": jnp.zeros((lang_dim,), jnp.float32),
        "embed": nrm((vocab, lang_dim)),
        "layers": [],
    }
    for _ in range(n_layers):
        lp = {
            # adaptor cross-attention (trainable, incl. scalar adaptor_gate)
            "xq_w": nrm((D, D)), "xq_b": jnp.zeros((D,), jnp.float32),
            "xkv_w": nrm((D, 2 * D)), "xkv_b": jnp.zeros((2 * D,), jnp.float32),
            "xo_w": nrm((D, D)), "xo_b": jnp.zeros((D,), jnp.float32),
            "gate": jnp.asarray(0.1, jnp.float32),           # adaptor_gate
            # (frozen) self-attention, fused QKV
            "sqkv_w": nrm((D, 3 * D)), "sqkv_b": jnp.zeros((3 * D,), jnp.float32),
            "so_w": nrm((D, D)), "so_b": jnp.zeros((D,), jnp.float32),
            # (frozen) MLP
            "f1_w": nrm((D, ffn_dim)), "f1_b": jnp.zeros((ffn_dim,), jnp.float32),
            "f2_w": nrm((ffn_dim, D)), "f2_b": jnp.zeros((D,), jnp.float32),
            # layer norms (f32)
            "ln1_g": jnp.ones((D,), jnp.float32), "ln1_b": jnp.zeros((D,), jnp.float32),
            "ln2_g": jnp.ones((D,), jnp.float32), "ln2_b": jnp.zeros((D,), jnp.float32),
            "ln3_g": jnp.ones((D,), jnp.float32), "ln3_b": jnp.zeros((D,), jnp.float32),
        }
        params["layers"].append(lp)
    return params


# ----------------------------------------------------------------------------
# Forward pass (mirrors Model.forward, non-generate branch)
# ----------------------------------------------------------------------------
def model_forward(params, text_ids, text_mask, frame_features, frame_mask,
                  max_len, pretext_length):
    B, T_full, Fin = frame_features.shape
    T = min(T_full, max_len)
    frames = frame_features[:, :T]
    fmask = frame_mask[:, :T].astype(jnp.float32)          # (B, T)
    fmask_rows = fmask.reshape(B * T)

    # --- sign_model: per-frame projection + GELU + mask (fused epilogue) ---
    sign_flat = linear(frames.reshape(B * T, Fin), params["sign_w"],
                       params["sign_b"], act="gelu", row_mask=fmask_rows)
    sign_dim = sign_flat.shape[-1]
    sign_x = sign_flat.reshape(B, T, sign_dim)
    dict_sign_output = {"enc_output": {"post_output": {"x": sign_x,
                                                       "mask": fmask}}}

    # --- post_model: sign_dim -> lang_dim projection + GELU + mask ---------
    post_flat = linear(sign_flat, params["post_w"], params["post_b"],
                       act="gelu", row_mask=fmask_rows)    # (B*T, D)
    D = post_flat.shape[-1]
    final_post = {"x": post_flat.reshape(B, T, D), "mask": fmask}

    # --- lang_model with gated adaptor cross-attention ---------------------
    E = params["embed"]                                     # (V, D) bf16
    h = jnp.take(E, text_ids, axis=0)                       # (B, S, D)
    S = text_ids.shape[1]
    tmask = text_mask.astype(jnp.float32)                   # (B, S)
    scale = 1.0 / math.sqrt(D)
    fused_chunks = (D % 128 == 0)   # block-offset path needs lane-aligned D

    gates = []
    for lp in params["layers"]:
        gates.append(lp["gate"])
        h_flat = h.reshape(B * S, D)

        # gated adaptor cross-attention over post features.  LN fused into the
        # q projection; KV projection stays fused and is consumed in place.
        q = linear(h_flat, lp["xq_w"], lp["xq_b"],
                   ln=(lp["ln1_g"], lp["ln1_b"]))           # (B*S, D)
        kv = linear(post_flat, lp["xkv_w"], lp["xkv_b"])    # (B*T, 2D)
        q3 = q.reshape(B, S, D)
        if fused_chunks:
            kv3 = kv.reshape(B, T, 2 * D)
            a = attention(q3, fmask, kv3, kv3, d=D, q_off=0, k_off=0, v_off=1,
                          scale=scale, causal=False)
        else:
            kk = kv[:, :D].reshape(B, T, D)
            vv = kv[:, D:].reshape(B, T, D)
            a = attention(q3, fmask, kk, vv, d=D, scale=scale, causal=False)
        h = linear(a.reshape(B * S, D), lp["xo_w"], lp["xo_b"],
                   residual=h_flat,
                   res_scale=jnp.tanh(lp["gate"])).reshape(B, S, D)
        h_flat = h.reshape(B * S, D)

        # (frozen) causal self-attention over text; LN fused into the fused
        # QKV projection, which is consumed in place.
        qkv = linear(h_flat, lp["sqkv_w"], lp["sqkv_b"],
                     ln=(lp["ln2_g"], lp["ln2_b"]))         # (B*S, 3D)
        if fused_chunks:
            qkv3 = qkv.reshape(B, S, 3 * D)
            a = attention(qkv3, tmask, qkv3, qkv3, d=D, q_off=0, k_off=1,
                          v_off=2, scale=scale, causal=True)
        else:
            qq = qkv[:, :D].reshape(B, S, D)
            kk = qkv[:, D:2 * D].reshape(B, S, D)
            vv = qkv[:, 2 * D:].reshape(B, S, D)
            a = attention(qq, tmask, kk, vv, d=D, scale=scale, causal=True)
        h = linear(a.reshape(B * S, D), lp["so_w"], lp["so_b"],
                   residual=h_flat).reshape(B, S, D)
        h_flat = h.reshape(B * S, D)

        # (frozen) MLP; LN fused into f1, residual fused into f2.
        f = linear(h_flat, lp["f1_w"], lp["f1_b"], act="gelu",
                   ln=(lp["ln3_g"], lp["ln3_b"]))
        h = linear(f, lp["f2_w"], lp["f2_b"],
                   residual=h_flat).reshape(B, S, D)

    # tied output head: slice rows first, contract E un-transposed (trans_b).
    # bf16 logits (largest HBM store in the model; use f32 only if the loss
    # needs it).
    h_sel = h[:, pretext_length - 1:]
    S_sel = h_sel.shape[1]
    logits = linear(h_sel.reshape(B * S_sel, D), E, transpose_w=True,
                    out_dtype=jnp.bfloat16).reshape(B, S_sel, -1)

    gates = jnp.stack(gates, axis=0)   # torch.stack(gates, dim=0) equivalent

    return {
        "logits": logits,
        "enc_output": dict_sign_output,
        "gates": gates,
    }


# ----------------------------------------------------------------------------
if __name__ == "__main__":
    # small shapes; hidden dims kept as (8,128) multiples so pads are no-ops
    B, S, T, Fin = 2, 8, 8, 16      # batch, text len, frames, frame feature dim
    SIGN_DIM, LANG_DIM = 128, 128
    VOCAB, N_LAYERS, FFN = 256, 2, 256
    PRETEXT_LENGTH, MAX_LEN = 2, 8

    root = jax.random.PRNGKey(0)
    k_p, k_ids, k_frames = jax.random.split(root, 3)

    params = init_params(k_p, frame_dim=Fin, sign_dim=SIGN_DIM,
                         lang_dim=LANG_DIM, vocab=VOCAB,
                         n_layers=N_LAYERS, ffn_dim=FFN)

    text_ids = jax.random.randint(k_ids, (B, S), 0, VOCAB, dtype=jnp.int32)
    text_mask = jnp.ones((B, S), jnp.int32)
    frame_features = jax.random.normal(k_frames, (B, T, Fin), dtype=jnp.float32)
    frame_mask = jnp.concatenate(
        [jnp.ones((B, T - 2), jnp.int32), jnp.zeros((B, 2), jnp.int32)], axis=1)

    out = model_forward(params, text_ids, text_mask, frame_features, frame_mask,
                        max_len=MAX_LEN, pretext_length=PRETEXT_LENGTH)

    jax.block_until_ready(out["logits"])
    jax.block_until_ready(out["gates"])
    jax.block_until_ready(out["enc_output"]["enc_output"]["post_output"]["x"])

    assert out["logits"].shape == (B, S - (PRETEXT_LENGTH - 1), VOCAB)
    assert out["gates"].shape == (N_LAYERS,)
    assert bool(jnp.all(jnp.isfinite(out["logits"].astype(jnp.float32))))
    print("KERNEL_OK")
</pallas_src>

<mosaic_0001>
module attributes {stable_mosaic.version = 11 : i64} {
  func.func @_matmul_kernel(%arg0: i32, %arg1: i32, %arg2: memref<8x128xbf16, #tpu.memory_space<vmem>>, %arg3: memref<128x128xbf16, #tpu.memory_space<vmem>>, %arg4: memref<1x128xf32, #tpu.memory_space<vmem>>, %arg5: memref<8x1xf32, #tpu.memory_space<vmem>>, %arg6: memref<8x128xbf16, #tpu.memory_space<vmem>>) attributes {dimension_semantics = [#tpu.dimension_semantics<parallel>, #tpu.dimension_semantics<parallel>], iteration_bounds = array<i64: 2, 1>, scalar_prefetch = 0 : i64, scratch_operands = 0 : i64, tpu.core_type = #tpu.core_type<tc>, window_params = [{transform_indices = @transform_0, window_bounds = array<i64: 8, 128>}, {transform_indices = @transform_1, window_bounds = array<i64: 128, 128>}, {transform_indices = @transform_2, window_bounds = array<i64: 1, 128>}, {transform_indices = @transform_3, window_bounds = array<i64: 8, 1>}, {transform_indices = @transform_4, window_bounds = array<i64: 8, 128>}]} {
    %c0 = arith.constant 0 : index
    %c0_0 = arith.constant 0 : index
    %0 = vector.load %arg2[%c0, %c0_0] : memref<8x128xbf16, #tpu.memory_space<vmem>>, vector<8x128xbf16>
    %c0_1 = arith.constant 0 : index
    %c0_2 = arith.constant 0 : index
    %1 = vector.load %arg3[%c0_1, %c0_2] : memref<128x128xbf16, #tpu.memory_space<vmem>>, vector<128x128xbf16>
    %cst = arith.constant dense<0.000000e+00> : vector<8x128xf32>
    %2 = tpu.matmul %0, %1, %cst {dimension_numbers = #tpu.dot_dimension_numbers<[1], [0], [0], [1], [0, 0, 1, 1], [], []>} : vector<8x128xbf16>, vector<128x128xbf16>, vector<8x128xf32> -> vector<8x128xf32>
    %c0_3 = arith.constant 0 : index
    %c0_4 = arith.constant 0 : index
    %3 = vector.load %arg4[%c0_3, %c0_4] : memref<1x128xf32, #tpu.memory_space<vmem>>, vector<1x128xf32>
    %4 = vector.broadcast %3 : vector<1x128xf32> to vector<8x128xf32>
    %5 = arith.addf %2, %4 : vector<8x128xf32>
    %6 = arith.mulf %5, %5 : vector<8x128xf32>
    %7 = arith.mulf %5, %6 : vector<8x128xf32>
    %cst_5 = arith.constant 4.471500e-02 : f32
    %8 = vector.broadcast %cst_5 : f32 to vector<8x128xf32>
    %9 = arith.mulf %8, %7 : vector<8x128xf32>
    %10 = arith.addf %5, %9 : vector<8x128xf32>
    %cst_6 = arith.constant 0.797884583 : f32
    %11 = vector.broadcast %cst_6 : f32 to vector<8x128xf32>
    %12 = arith.mulf %11, %10 : vector<8x128xf32>
    %13 = math.tanh %12 : vector<8x128xf32>
    %cst_7 = arith.constant 1.000000e+00 : f32
    %14 = vector.broadcast %cst_7 : f32 to vector<8x128xf32>
    %15 = arith.addf %14, %13 : vector<8x128xf32>
    %cst_8 = arith.constant 5.000000e-01 : f32
    %16 = vector.broadcast %cst_8 : f32 to vector<8x128xf32>
    %17 = arith.mulf %16, %15 : vector<8x128xf32>
    %18 = arith.mulf %5, %17 : vector<8x128xf32>
    %c0_9 = arith.constant 0 : index
    %c0_10 = arith.constant 0 : index
    %19 = vector.load %arg5[%c0_9, %c0_10] : memref<8x1xf32, #tpu.memory_space<vmem>>, vector<8x1xf32>
    %20 = vector.broadcast %19 : vector<8x1xf32> to vector<8x128xf32>
    %21 = arith.mulf %18, %20 : vector<8x128xf32>
    %22 = arith.truncf %21 : vector<8x128xf32> to vector<8x128xbf16>
    %c0_11 = arith.constant 0 : index
    %c0_12 = arith.constant 0 : index
    %23 = vector.load %arg6[%c0_11, %c0_12] : memref<8x128xbf16, #tpu.memory_space<vmem>>, vector<8x128xbf16>
    tpu.vector_store %arg6[%c0_11, %c0_12], %22 {strides = array<i32>} : memref<8x128xbf16, #tpu.memory_space<vmem>>, vector<8x128xbf16>,
    return
  }
  func.func @transform_0(%arg0: i32, %arg1: i32) -> (i32, i32) {
    %c0_i32 = arith.constant 0 : i32
    %c0_i32_0 = arith.constant 0 : i32
    return %arg0, %c0_i32 : i32, i32
  }
  func.func @transform_1(%arg0: i32, %arg1: i32) -> (i32, i32) {
    %c0_i32 = arith.constant 0 : i32
    %c0_i32_0 = arith.constant 0 : i32
    return %c0_i32, %arg1 : i32, i32
  }
  func.func @transform_2(%arg0: i32, %arg1: i32) -> (i32, i32) {
    %c0_i32 = arith.constant 0 : i32
    %c0_i32_0 = arith.constant 0 : i32
    return %c0_i32, %arg1 : i32, i32
  }
  func.func @transform_3(%arg0: i32, %arg1: i32) -> (i32, i32) {
    %c0_i32 = arith.constant 0 : i32
    %c0_i32_0 = arith.constant 0 : i32
    return %arg0, %c0_i32 : i32, i32
  }
  func.func @transform_4(%arg0: i32, %arg1: i32) -> (i32, i32) {
    %c0_i32 = arith.constant 0 : i32
    return %arg0, %arg1 : i32, i32
  }
}

</mosaic_0001>

<bundles_post_ra>
// kernel: tpu_custom_call.1
= control target key start
LH: loop header
LB: loop body
LE: loop exit
PB: predicated region body
PF: predicated region fallthrough
CT: control target
= control target key end

     0   :  { %9 = vsyncpa [#allocation3], 0  ;;  %s947_s0 = inlined_call_operand.vmem [shape: bf16[16,128], index: 0, kind: input, shape index: {}]   ;;  %s948_s1 = inlined_call_operand.hbm [shape: bf16[128,128], index: 1, kind: input, shape index: {}]   ;;  %s949_s2 = inlined_call_operand.vmem [shape: f32[1,128], index: 2, kind: input, shape index: {}]   ;;  %s950_s3 = inlined_call_operand.vmem [shape: f32[16,1], index: 3, kind: input, shape index: {}]   ;;  %s951_s4 = inlined_call_operand.hbm [shape: bf16[16,128], index: 4, kind: output, shape index: {}]  }
   0x1   :  { %10 = vsyncpa [#allocation4], 0 }
   0x2   :  { %12 = vsyncpa [#allocation4 + $0x1], 0  ;;  %s791_s15 = smov 0   ;;  %s793_s16 = smov 0  }
   0x3   :  { %s795_s17 = smov 0   ;;  %s797_s18 = smov 0  }
   0x4   :  { %s799_s19 = smov 0   ;;  %s801_s20 = smov 0  }
   0x5 LB: > { %s512_s21 = sadd.s32 4294967295, %s757_s20   ;;  %s513_s22 = sadd.s32 4294967294, %s757_s20   ;;  %s757_s20 = sphi %s801_s20, %s18_s20   ;;  %s753_s19 = sphi %s799_s19, %s969_s19   ;;  %s749_s18 = sphi %s797_s18, %s968_s18   ;;  %s745_s17 = sphi %s795_s17, %s967_s17   ;;  %s741_s16 = sphi %s793_s16, %s966_s16   ;;  %s737_s15 = sphi %s791_s15, %s965_s15  }
   0x6   : > { %s30_s23 = sadd.s32 1, %s753_s19  ;;  %s143_s24 = sadd.s32 1, %s745_s17 }
   0x7   : > { %p32_p0 = scmp.ge.s32.totalorder %s30_s23, 2  ;;  %p153_p1 = scmp.ne.s32.totalorder %s745_s17, %s741_s16 }
   0x8   : > { %p154_p2 = scmp.eq.s32.totalorder %s512_s21, 1  ;;  %p159_p3 = scmp.ne.s32.totalorder %s741_s16, %s737_s15 }
   0x9   : > { %s971_s23 = smov (%p32_p0, %s30_s23), 0  ;;  %p160_p5 = scmp.eq.s32.totalorder %s513_s22, 1 }
   0xa   : > { %p831_p4 = por %p154_p2, %p153_p1  ;;  %s138_s26 = ssub.s32 %s753_s19, %s971_s23 }
   0xb   : > { %p514_p6 = scmp.ge.s32.totalorder %s757_s20, 1  ;;  %p141_p7 = scmp.eq.s32.totalorder %s138_s26, 0 }
   0xc   : > { %s956_s25 = scalar_select %p831_p4, 1, 0 }
   0xd   : > { %p838_p8 = por %p160_p5, %p159_p3  ;;  %p167_p9 = scmp.lt.s32.totalorder %s757_s20, 3 }
   0xe   : > { %s844_s28 = scalar_select %p141_p7, %s745_s17, %s143_s24  }
   0xf   : > { %s957_s27 = scalar_select %p838_p8, 1, 0 }
  0x10   : > { %p846_p10 = pnand %p514_p6, %p167_p9  ;;  %p850_p11 = scmp.eq.s32.totalorder %s512_s21, 0 }
  0x11   : > { %s759_s5 = smov [#allocation2]   ;;  %s647_s10 = scalar_lea.hbm %s948_s1, 1024 }
  0x12   : > { %s958_s29 = scalar_select %p846_p10, 1, 0 }
  0x13   : > { %s959_s30 = scalar_select %p850_p11, 1, 0 }
  0x14   : > { %p571_p12 = pneg %p846_p10  ;;  %s181_s6 = sshll.u32 %s759_s5, 4  ;;  %s182_s6 = int_to_ptr.vmem [resolvable:$true] %s181_s6 }
  0x15   : > { %p648_p0 = scmp.ne.s32.totalorder %s948_s1, %s647_s10  ;;  %p654_p5 = scmp.lt.u32.totalorder %s647_s10, %s948_s1 }
  0x16   : > { %p858_p13 = pnand %p850_p11, %p571_p12 }
  0x18   : > { %p649_p1 = pneg %p858_p13 }
  0x1a   : > { %p650_p2 = pnand %p649_p1, %p648_p0 }
  0x1c   : > { %p651_p3 = pneg %p650_p2 }
  0x1e   : > { %p656_p6 = pnand %p654_p5, %p651_p3 }
  0x20   : > { %659 = shalt.err (!%p656_p6)
}
  0x21   : > { %s660_s21 = scalar_lea.vmem %s182_s6, 1024  ;;  %p668_p8 = scmp.lt.s32.totalorder %s182_s6, %s182_s6 }
  0x22   : > { %p661_p7 = scmp.ne.s32.totalorder %s182_s6, %s660_s21  ;;  %p669_p4 = scmp.lt.s32.totalorder %s660_s21, %s660_s21 }
  0x24   : > { %p663_p9 = pnand %p661_p7, %p649_p1  ;;  %p670_p11 = por %p669_p4, %p668_p8 }
  0x26   : > { %p664_p12 = pneg %p663_p9 }
  0x28   : > { %p671_p10 = pnand %p670_p11, %p664_p12 }
  0x2a   : > { %674 = shalt.err (!%p671_p10)
}
  0x2b   : > { %s760_s22 = smov 64   ;;  %s761_s24 = smov 4  }
  0x2c   : > { %574 = dma.hbm_to_vmem [thread:$0]  (!%p858_p13), %s948_s1, 1024, %s182_s6, [#allocation3], %s760_s22, %s760_s22, %s761_s24  }
  0x2d   : > { %p961_p0 = scmp.ne.s32.totalorder %s958_s29, 0 }
  0x2e   : > { %p962_p2 = scmp.ne.s32.totalorder (!%p961_p0), %s959_s30, 0 }
  0x2f   : > { %217 = sbr.rel (%p961_p0) target bundleno = 347 (0x15b), region = 36 }
  0x36   : > { %728 = dma.done.wait (%p962_p2), [#allocation3], 1024  }
  0x37   : > { %730 = vsyncadd (%p962_p2), [#allocation3], 4294966272  ;;  %v762_v0 = vmov 0.0   ;;  %vm763_vm0 = vmmov 0   ;;  %v764_v1 = vmov 0   ;;  %p249_p4 = scmp.lt.s32.totalorder %s749_s18, 1 }
  0x38   : > { %545 = vmatprep.subr.bf16.mxu0 %v762_v0  ;;  %561 = vmatprep.mubr.msk.bf16.mxu0 %vm763_vm0, %v762_v0  ;;  %v637_v2 = vld [vmem:[#allocation2] sm:$0xff]   ;;  %v638_v3 = vld [vmem:[#allocation2 + $0x8] sm:$0xff]   ;;  %v639_v4 = vld [vmem:[#allocation2 + $0x10] sm:$0xff]   ;;  %s246_s21 = sand.u32 1, %s741_s16   ;;  %s533_s24 = sshll.u32 %s749_s18, 6 }
  0x39   : > { %636 = vset.pattern.permute.xlu0 %v764_v1  ;;  %s250_s6 = scalar_select %p249_p4, %s749_s18, 1  ;;  %546 = vmatpush3.bf16.msra.mxu0 %v637_v2  ;;  %v640_v6 = vld [vmem:[#allocation2 + $0x18] sm:$0xff]   ;;  %v641_v7 = vld [vmem:[#allocation2 + $0x20] sm:$0xff]   ;;  %v642_v8 = vld [vmem:[#allocation2 + $0x28] sm:$0xff]  }
  0x3a   : > { %547 = vmatprep.subr.bf16.mxu0 %v762_v0  ;;  %v643_v9 = vld [vmem:[#allocation2 + $0x30] sm:$0xff]   ;;  %v644_v10 = vld [vmem:[#allocation2 + $0x38] sm:$0xff]   ;;  %v523_v12 = vld [vmem:[%s949_s2] ss:$0 sm:$0xff]  ;;  %s520_s22 = sshll.u32 %s246_s21, 2  ;;  %s900_s7 = scalar_lea.hbm %s951_s4, %s533_s24 }
  0x3b   : > { %s522_s29 = sshll.u32 %s250_s6, 3  ;;  %s521_s9 = sshll.u32 %s250_s6, 2 }
  0x3c   : > { %s259_s30 = scalar_lea.vmem %s950_s3, %s522_s29  ;;  %s252_s12 = scalar_lea.vmem %s947_s0, %s521_s9 }
  0x3d   : > { %548 = vmatpush3.bf16.msra.mxu0 %v638_v3  ;;  %v382_v5 = vld [vmem:[%s259_s30] sm:$0xff]  ;;  %s248_s26 = scalar_lea.vmem [#allocation5], %s520_s22  ;;  %s392_s8 = scalar_lea.sflag [#allocation4], %s246_s21 }
  0x3e   : > { %549 = vmatprep.subr.bf16.mxu0 %v762_v0  ;;  %385 = vperm.xlu0 %636, %v382_v5   ;;  %v261_v11 = vld [vmem:[%s252_s12] sm:$0xf]  ;;  %s406_s5 = sshll.u32 %s248_s26, 4  ;;  %p963_p10 = scmp.ne.s32.totalorder %s956_s25, 0  ;;  %s902_s5 = int_to_ptr.vmem [resolvable:$true] %s406_s5 }
  0x3f   : > { %s675_s30 = scalar_lea.vmem %s902_s5, 64  ;;  %s765_s18 = smov [#allocation5]  }
  0x40   : > { %p676_p8 = scmp.ne.s32.totalorder %s902_s5, %s675_s30  ;;  %s679_s9 = sshll.u32 %s765_s18, 4  ;;  %s680_s9 = int_to_ptr.vmem [resolvable:$false] %s679_s9 }
  0x41   : > { %550 = vmatpush3.bf16.msra.mxu0 %v639_v4  ;;  %s681_s10 = scalar_lea.vmem %s680_s9, 128  ;;  %p682_p1 = scmp.lt.s32.totalorder %s902_s5, %s680_s9 }
  0x42   : > { %551 = vmatprep.subr.bf16.mxu0 %v762_v0  ;;  %p677_p11 = pnand %p676_p8, %p963_p10  ;;  %p683_p3 = scmp.lt.s32.totalorder %s681_s10, %s675_s30 }
  0x44   : > { %p678_p13 = pneg %p677_p11  ;;  %p684_p5 = por %p683_p3, %p682_p1 }
  0x45   : > { %552 = vmatpush3.bf16.msra.mxu0 %v640_v6 }
  0x46   : > { %553 = vmatprep.subr.bf16.mxu0 %v762_v0  ;;  %p685_p6 = pnand %p684_p5, %p678_p13 }
  0x49   : > { %554 = vmatpush3.bf16.msra.mxu0 %v641_v7 }
  0x4a   : > { %555 = vmatprep.subr.bf16.mxu0 %v762_v0 }
  0x4d   : > { %556 = vmatpush3.bf16.msra.mxu0 %v642_v8 }
  0x4e   : > { %557 = vmatprep.subr.bf16.mxu0 %v762_v0 }
  0x51   : > { %558 = vmatpush3.bf16.msra.mxu0 %v643_v9 }
  0x52   : > { %559 = vmatprep.subr.bf16.mxu0 %v762_v0 }
  0x55   : > { %560 = vmatpush3.bf16.msra.mxu0 %v644_v10 }
  0x58   : > { %562 = vmatmul.mubr.bf16.vlgmr.msra.gmra.mrb[0].mxu0 %v261_v11 }
  0xbd   : > { %v386_v26 = vpop.permute.xlu0 %385 }
 0x12b   : > { %v367_v13 = vpop.f32.mrb[0].mxu0 }
 0x12c   : > { %v368_v14 = vadd.f32 %v523_v12, %v367_v13  ;;  %v563_v15 = vpop.f32.mrb[1].mxu0 }
 0x12d   : > { %v370_v16 = vpop.f32.mrb[2].mxu0 }
 0x12e   : > { %v373_v17 = vmul.f32 %v368_v14, %v368_v14  ;;  %v564_v18 = vpop.f32.mrb[3].mxu0 }
 0x130   : > { %v374_v19 = vmul.f32 %v373_v17, %v368_v14 }
 0x132   : > { %v375_v20 = vmul.f32 0.044715, %v374_v19 }
 0x134   : > { %v376_v21 = vadd.f32 %v375_v20, %v368_v14 }
 0x136   : > { %v377_v22 = vmul.f32 0.7978846, %v376_v21 }
 0x138   : > { %645 = vtanh.f32 %v377_v22 }
 0x142   : > { %v646_v23 = vpop.eup %645 }
 0x143   : > { %v379_v24 = vadd.f32 1.0, %v646_v23 }
 0x145   : > { %v380_v25 = vmul.f32 0.5, %v379_v24 }
 0x147   : > { %v381_v27 = vmul.f32 %v380_v25, %v368_v14 }
 0x149   : > { %v388_v28 = vmul.f32 %v386_v26, %v381_v27 }
 0x14b   : > { %v389_v29 = vpack.c.bf16 %v388_v28, %v388_v28 }
 0x14d   : > { %390 = vst [vmem:[%s248_s26] sm:$0xf] %v389_v29 }
 0x14e   : > { %688 = shalt.err (!%p685_p6)
}
 0x14f   : > { %s689_s11 = scalar_lea.hbm %s900_s7, 64  ;;  %s693_s14 = scalar_lea.hbm %s951_s4, 128 }
 0x150   : > { %p690_p7 = scmp.ne.s32.totalorder %s900_s7, %s689_s11  ;;  %p694_p0 = scmp.lt.u32.totalorder %s900_s7, %s951_s4 }
 0x151   : > { %p695_p2 = scmp.lt.u32.totalorder %s693_s14, %s689_s11  ;;  %p697_p8 = scmp.lt.u32.totalorder %s689_s11, %s900_s7 }
 0x152   : > { %p691_p9 = pnand %p690_p7, %p963_p10 }
 0x153   : > { %p696_p4 = por %p695_p2, %p694_p0 }
 0x154   : > { %p692_p12 = pneg %p691_p9 }
 0x155   : > { %p698_p11 = por %p697_p8, %p696_p4 }
 0x157   : > { %p699_p13 = pnand %p698_p11, %p692_p12 }
 0x159   : > { %702 = shalt.err (!%p699_p13)
}
 0x15a   : > { %569 = dma.vmem_to_hbm [thread:$0]  (%p963_p10), %s902_s5, 64, %s900_s7, %s392_s8  }
 0x15b PF: > { %p581_p1 = scmp.ge.s32.totalorder %s757_s20, 2  ;;  %s418_s24 = sand.u32 1, %s737_s15  }
 0x15c   : > { %p964_p3 = scmp.ne.s32.totalorder %s957_s27, 0  ;;  %s419_s26 = scalar_lea.sflag [#allocation4], %s418_s24 }
 0x15e   : > { %p576_p5 = pnand %p581_p1, %p964_p3 }
 0x160   : > { %732 = dma.done.wait (!%p576_p5), %s419_s26, 64  }
 0x161   : > { %734 = vsyncadd (!%p576_p5), %s419_s26, 4294967232  ;;  %s18_s20 = sadd.s32 1, %s757_s20   ;;  %s965_s15 = smov %s741_s16 }
 0x162   : > { %p15_p6 = scmp.ge.s32.totalorder %s18_s20, 4   ;;  %s966_s16 = smov %s745_s17 }
 0x163   : > { %s967_s17 = smov %s844_s28  ;;  %s968_s18 = smov %s753_s19 }
 0x164   : > { %s969_s19 = smov %s971_s23  ;;  %17 = sbr.rel (!%p15_p6) target bundleno = 5 (0x5), region = 83 }
 0x16b   :  { %424 = vsyncpa [#allocation3], 1 }
 0x16c   :  { %426 = vsyncpa [#allocation3 + $0x1], 1 }
 0x16d   :  { %427 = vsyncpa [#allocation4], 1 }
 0x16e   :  { %429 = vsyncpa [#allocation4 + $0x1], 1 }

</bundles_post_ra>
